<compile_context>
chip_gen: v7x
topology: tpu7x:2x2x1
jax: 0.10.0
libtpu: 0.0.40
codegen_flags: <defaults>
</compile_context>

<pallas_src>
import jax
import jax.numpy as jnp
from jax.experimental import pallas as pl
from jax.experimental.pallas import tpu as pltpu


def _baseline_kernel(x_ref, w_ref, b_ref, pool_ref, base_ref, pooled_ref):
    # x_ref:      (1, Cin, HW)  bf16  one batch element, NCHW-flat (no transpose)
    # w_ref:      (Ct,  Cin)    bf16  1x1-conv weight tile (stand-in base net)
    # b_ref:      (Ct,  1)      f32   bias tile
    # pool_ref:   (HW,  2)      f32   pooling matrix [ones/HW, mask/HW]
    # base_ref:   (1, Ct, HW)   f32   base_out tile (already NCHW layout)
    # pooled_ref: (1, Ct, 2)    f32   [:, :, 0] = GAP, [:, :, 1] = masked GAP
    x = x_ref[0]                                             # (Cin, HW) bf16
    base = jnp.dot(w_ref[...], x,
                   preferred_element_type=jnp.float32)       # MXU, f32 accumulate
    base = base + b_ref[...]                                 # (Ct,1) lane-broadcast
    base_ref[0] = base.astype(base_ref.dtype)

    # GAP + masked-GAP fused into one small MXU matmul (no mask multiply, no
    # separate sublane reductions). Mean uses HW in the denominator, matching
    # AdaptiveAvgPool2d(1) on the full (masked) feature map.
    pooled_ref[0] = jnp.dot(base, pool_ref[...],
                            preferred_element_type=jnp.float32
                            ).astype(pooled_ref.dtype)


def _pick_cout_tile(cout):
    # Largest 128-aligned tile <= 512 that divides Cout; fall back to full Cout
    # for small / unaligned demo sizes (block == full dim is always legal).
    if cout % 128 != 0:
        return cout
    for t in (512, 256, 128):
        if cout % t == 0:
            return t
    return cout


def baseline_forward(x_nchw, w, b, mask_hw, *, cout_tile=None):
    """Baseline.forward hot path.

    x_nchw : (N, Cin, H, W) f32
    w      : (Cout, Cin)    1x1-conv weight (stand-in base net)
    b      : (Cout,)        bias
    mask_hw: (H*W,)         spatial mask used by the base net for mask_base_out
    Returns (base_out NCHW f32, global_feat (N, Cout), mask_global_feat (N, Cout)).
    """
    N, Cin, H, W = x_nchw.shape
    HW = H * W
    Cout = w.shape[0]
    if cout_tile is None:
        cout_tile = _pick_cout_tile(Cout)
    assert Cout % cout_tile == 0
    n_ct = Cout // cout_tile

    # NCHW -> (N, Cin, HW): free reshape, NOT a transpose. bf16 inputs halve
    # HBM reads / VMEM footprint; accumulation stays f32 on the MXU.
    x = x_nchw.reshape(N, Cin, HW).astype(jnp.bfloat16)
    wt = w.astype(jnp.bfloat16)
    b2 = b.reshape(Cout, 1).astype(jnp.float32)
    inv_hw = jnp.float32(1.0 / HW)
    pool = jnp.stack(
        [jnp.full((HW,), inv_hw, dtype=jnp.float32),
         mask_hw.astype(jnp.float32) * inv_hw],
        axis=1)                                              # (HW, 2)

    grid_spec = pltpu.PrefetchScalarGridSpec(
        num_scalar_prefetch=0,
        grid=(N, n_ct),
        in_specs=[
            pl.BlockSpec((1, Cin, HW), lambda n, c: (n, 0, 0)),   # x: const over c
            pl.BlockSpec((cout_tile, Cin), lambda n, c: (c, 0)),  # weight tile
            pl.BlockSpec((cout_tile, 1), lambda n, c: (c, 0)),    # bias tile
            pl.BlockSpec((HW, 2), lambda n, c: (0, 0)),           # pooling matrix
        ],
        out_specs=[
            pl.BlockSpec((1, cout_tile, HW), lambda n, c: (n, c, 0)),
            pl.BlockSpec((1, cout_tile, 2), lambda n, c: (n, c, 0)),
        ],
    )

    base_flat, pooled = pl.pallas_call(
        _baseline_kernel,
        out_shape=(
            jax.ShapeDtypeStruct((N, Cout, HW), jnp.float32),
            jax.ShapeDtypeStruct((N, Cout, 2), jnp.float32),
        ),
        grid_spec=grid_spec,
        compiler_params=pltpu.CompilerParams(
            dimension_semantics=("parallel", "parallel"),
            vmem_limit_bytes=32 * 1024 * 1024,
        ),
    )(x, wt, b2, pool)

    base_out = base_flat.reshape(N, Cout, H, W)   # free reshape: already NCHW
    global_feat = pooled[:, :, 0]
    mask_global_feat = pooled[:, :, 1]
    return base_out, global_feat, mask_global_feat


def _reference(x_nchw, w, b, mask_hw):
    # Same math (including the bf16 rounding of x / w) in plain JAX.
    N, Cin, H, W = x_nchw.shape
    Cout = w.shape[0]
    xb = x_nchw.reshape(N, Cin, H * W).astype(jnp.bfloat16).astype(jnp.float32)
    wb = w.astype(jnp.bfloat16).astype(jnp.float32)
    base = jnp.einsum('oc,nch->noh', wb, xb,
                      preferred_element_type=jnp.float32) + b.reshape(1, Cout, 1)
    gap = base.mean(axis=2)
    mgap = (base * mask_hw.reshape(1, 1, H * W)).mean(axis=2)
    return base.reshape(N, Cout, H, W), gap, mgap


if __name__ == "__main__":
    # Small shapes consistent with the module's conv-feature-map forward.
    N, Cin, H, W = 2, 4, 16, 16
    Cout = 256          # small, 128-aligned stand-in for in_planes = 2048
    mask_ratio = 0.25   # cfg.MODEL.MASK_RATIO stand-in

    key = jax.random.PRNGKey(0)
    kx, kw, kb = jax.random.split(key, 3)
    x = jax.random.normal(kx, (N, Cin, H, W), dtype=jnp.float32)
    w = jax.random.normal(kw, (Cout, Cin), dtype=jnp.float32) * 0.1
    b = jax.random.normal(kb, (Cout,), dtype=jnp.float32) * 0.01

    # Deterministic spatial mask: zero out the first mask_ratio fraction of positions.
    HW = H * W
    n_masked = int(mask_ratio * HW)
    mask_hw = (jnp.arange(HW) >= n_masked).astype(jnp.float32)

    # cout_tile=128 exercises the Cout-tiling grid axis even at this small size.
    base_out, gfeat, mgfeat = baseline_forward(x, w, b, mask_hw, cout_tile=128)
    jax.block_until_ready((base_out, gfeat, mgfeat))

    ref_base, ref_g, ref_mg = _reference(x, w, b, mask_hw)
    assert jnp.allclose(base_out, ref_base, atol=2e-4, rtol=2e-4)
    assert jnp.allclose(gfeat, ref_g, atol=2e-4, rtol=2e-4)
    assert jnp.allclose(mgfeat, ref_mg, atol=2e-4, rtol=2e-4)
    assert base_out.shape == (N, Cout, H, W)
    assert gfeat.shape == (N, Cout) and mgfeat.shape == (N, Cout)

    print("KERNEL_OK")
</pallas_src>

<mosaic_0001>
module attributes {stable_mosaic.version = 11 : i64} {
  func.func @_baseline_kernel(%arg0: i32, %arg1: i32, %arg2: memref<1x4x256xbf16, #tpu.memory_space<vmem>>, %arg3: memref<128x4xbf16, #tpu.memory_space<vmem>>, %arg4: memref<128x1xf32, #tpu.memory_space<vmem>>, %arg5: memref<256x2xf32, #tpu.memory_space<vmem>>, %arg6: memref<1x128x256xf32, #tpu.memory_space<vmem>>, %arg7: memref<1x128x2xf32, #tpu.memory_space<vmem>>) attributes {dimension_semantics = [#tpu.dimension_semantics<parallel>, #tpu.dimension_semantics<parallel>], iteration_bounds = array<i64: 2, 2>, scalar_prefetch = 0 : i64, scratch_operands = 0 : i64, tpu.core_type = #tpu.core_type<tc>, window_params = [{transform_indices = @transform_0, window_bounds = array<i64: 1, 4, 256>}, {transform_indices = @transform_1, window_bounds = array<i64: 128, 4>}, {transform_indices = @transform_2, window_bounds = array<i64: 128, 1>}, {pipeline_mode = #tpu.pipeline_mode<synchronous>, transform_indices = @transform_3, window_bounds = array<i64: 256, 2>}, {transform_indices = @transform_4, window_bounds = array<i64: 1, 128, 256>}, {transform_indices = @transform_5, window_bounds = array<i64: 1, 128, 2>}]} {
    %c0 = arith.constant 0 : index
    %c0_0 = arith.constant 0 : index
    %c0_1 = arith.constant 0 : index
    %0 = vector.load %arg2[%c0, %c0_0, %c0_1] : memref<1x4x256xbf16, #tpu.memory_space<vmem>>, vector<1x4x256xbf16>
    %1 = vector.shape_cast %0 : vector<1x4x256xbf16> to vector<4x256xbf16>
    %c0_2 = arith.constant 0 : index
    %c0_3 = arith.constant 0 : index
    %2 = vector.load %arg3[%c0_2, %c0_3] : memref<128x4xbf16, #tpu.memory_space<vmem>>, vector<128x4xbf16>
    %cst = arith.constant dense<0.000000e+00> : vector<128x256xf32>
    %3 = tpu.matmul %2, %1, %cst {dimension_numbers = #tpu.dot_dimension_numbers<[1], [0], [0], [1], [0, 0, 1, 1], [], []>} : vector<128x4xbf16>, vector<4x256xbf16>, vector<128x256xf32> -> vector<128x256xf32>
    %c0_4 = arith.constant 0 : index
    %c0_5 = arith.constant 0 : index
    %4 = vector.load %arg4[%c0_4, %c0_5] : memref<128x1xf32, #tpu.memory_space<vmem>>, vector<128x1xf32>
    %5 = vector.broadcast %4 : vector<128x1xf32> to vector<128x256xf32>
    %6 = arith.addf %3, %5 : vector<128x256xf32>
    %c0_6 = arith.constant 0 : index
    %c0_7 = arith.constant 0 : index
    %c0_8 = arith.constant 0 : index
    %7 = vector.load %arg6[%c0_6, %c0_7, %c0_8] : memref<1x128x256xf32, #tpu.memory_space<vmem>>, vector<1x128x256xf32>
    %8 = vector.shape_cast %7 : vector<1x128x256xf32> to vector<128x256xf32>
    %9 = vector.shape_cast %6 : vector<128x256xf32> to vector<1x128x256xf32>
    tpu.vector_store %arg6[%c0_6, %c0_7, %c0_8], %9 {strides = array<i32>} : memref<1x128x256xf32, #tpu.memory_space<vmem>>, vector<1x128x256xf32>,
    %c0_9 = arith.constant 0 : index
    %c0_10 = arith.constant 0 : index
    %10 = vector.load %arg5[%c0_9, %c0_10] : memref<256x2xf32, #tpu.memory_space<vmem>>, vector<256x2xf32>
    %cst_11 = arith.constant dense<0.000000e+00> : vector<128x2xf32>
    %11 = tpu.matmul %6, %10, %cst_11 {dimension_numbers = #tpu.dot_dimension_numbers<[1], [0], [0], [1], [0, 0, 1, 1], [], []>} : vector<128x256xf32>, vector<256x2xf32>, vector<128x2xf32> -> vector<128x2xf32>
    %c0_12 = arith.constant 0 : index
    %c0_13 = arith.constant 0 : index
    %c0_14 = arith.constant 0 : index
    %12 = vector.load %arg7[%c0_12, %c0_13, %c0_14] : memref<1x128x2xf32, #tpu.memory_space<vmem>>, vector<1x128x2xf32>
    %13 = vector.shape_cast %12 : vector<1x128x2xf32> to vector<128x2xf32>
    %14 = vector.shape_cast %11 : vector<128x2xf32> to vector<1x128x2xf32>
    tpu.vector_store %arg7[%c0_12, %c0_13, %c0_14], %14 {strides = array<i32>} : memref<1x128x2xf32, #tpu.memory_space<vmem>>, vector<1x128x2xf32>,
    return
  }
  func.func @transform_0(%arg0: i32, %arg1: i32) -> (i32, i32, i32) {
    %c0_i32 = arith.constant 0 : i32
    %c0_i32_0 = arith.constant 0 : i32
    %c0_i32_1 = arith.constant 0 : i32
    return %arg0, %c0_i32, %c0_i32_0 : i32, i32, i32
  }
  func.func @transform_1(%arg0: i32, %arg1: i32) -> (i32, i32) {
    %c0_i32 = arith.constant 0 : i32
    %c0_i32_0 = arith.constant 0 : i32
    return %arg1, %c0_i32 : i32, i32
  }
  func.func @transform_2(%arg0: i32, %arg1: i32) -> (i32, i32) {
    %c0_i32 = arith.constant 0 : i32
    %c0_i32_0 = arith.constant 0 : i32
    return %arg1, %c0_i32 : i32, i32
  }
  func.func @transform_3(%arg0: i32, %arg1: i32) -> (i32, i32) {
    %c0_i32 = arith.constant 0 : i32
    %c0_i32_0 = arith.constant 0 : i32
    %c0_i32_1 = arith.constant 0 : i32
    return %c0_i32, %c0_i32_0 : i32, i32
  }
  func.func @transform_4(%arg0: i32, %arg1: i32) -> (i32, i32, i32) {
    %c0_i32 = arith.constant 0 : i32
    %c0_i32_0 = arith.constant 0 : i32
    return %arg0, %arg1, %c0_i32 : i32, i32, i32
  }
  func.func @transform_5(%arg0: i32, %arg1: i32) -> (i32, i32, i32) {
    %c0_i32 = arith.constant 0 : i32
    %c0_i32_0 = arith.constant 0 : i32
    return %arg0, %arg1, %c0_i32 : i32, i32, i32
  }
}

</mosaic_0001>

<bundles_post_ra>
// kernel: tpu_custom_call.1
= control target key start
LH: loop header
LB: loop body
LE: loop exit
PB: predicated region body
PF: predicated region fallthrough
CT: control target
= control target key end

     0   :  { %11 = vsyncpa [#allocation3], 0  ;;  %s1769_s0 = inlined_call_operand.vmem [shape: bf16[2,4,256], index: 0, kind: input, shape index: {}]   ;;  %s1770_s1 = inlined_call_operand.vmem [shape: bf16[256,4], index: 1, kind: input, shape index: {}]   ;;  %s1771_s2 = inlined_call_operand.vmem [shape: f32[256,1], index: 2, kind: input, shape index: {}]   ;;  %s1772_s3 = inlined_call_operand.vmem [shape: f32[256,2], index: 3, kind: input, shape index: {}]   ;;  %s1773_s4 = inlined_call_operand.hbm [shape: f32[2,256,256], index: 4, kind: output, shape index: {0}]   ;;  %s1774_s5 = inlined_call_operand.vmem [shape: f32[2,256,2], index: 5, kind: output, shape index: {1}]  }
   0x1   :  { %13 = vsyncpa [#allocation3 + $0x1], 0  ;;  %s1391_s18 = smov 0   ;;  %s1393_s19 = smov 0  }
   0x2   :  { %s1395_s20 = smov 0   ;;  %s1397_s21 = smov 0  }
   0x3   :  { %s1399_s22 = smov 0   ;;  %s1401_s23 = smov 0  }
   0x4   :  { %s1403_s24 = smov 0   ;;  %s1405_s25 = smov 0  }
   0x5 LB: > { %s1007_s26 = sadd.s32 4294967295, %s1355_s25   ;;  %s1008_s27 = sadd.s32 4294967294, %s1355_s25   ;;  %s1355_s25 = sphi %s1405_s25, %s19_s25   ;;  %s1351_s24 = sphi %s1403_s24, %s1786_s24   ;;  %s1347_s23 = sphi %s1401_s23, %s1785_s23   ;;  %s1343_s22 = sphi %s1399_s22, %s1784_s22   ;;  %s1339_s21 = sphi %s1397_s21, %s1783_s21   ;;  %s1335_s20 = sphi %s1395_s20, %s1782_s20   ;;  %s1331_s19 = sphi %s1393_s19, %s1781_s19   ;;  %s1327_s18 = sphi %s1391_s18, %s1780_s18  }
   0x6   : > { %s28_s28 = sadd.s32 1, %s1347_s23  ;;  %s31_s29 = sadd.s32 1, %s1351_s24 }
   0x7   : > { %p29_p0 = scmp.ge.s32.totalorder %s28_s28, 2  ;;  %p149_p1 = scmp.ne.s32.totalorder %s1335_s20, %s1331_s19 }
   0x8   : > { %p150_p2 = scmp.eq.s32.totalorder %s1007_s26, 3  ;;  %p155_p5 = scmp.ne.s32.totalorder %s1331_s19, %s1327_s18 }
   0x9   : > { %s1788_s28 = smov (%p29_p0, %s28_s28), 0  ;;  %s1790_s29 = smov (!%p29_p0, %s31_s29), %s1351_s24 }
   0xa   : > { %s135_s30 = ssub.s32 %s1347_s23, %s1788_s28  ;;  %p1442_p3 = por %p150_p2, %p149_p1 }
   0xb   : > { %p33_p4 = scmp.ge.s32.totalorder %s1790_s29, 2  ;;  %p156_p6 = scmp.eq.s32.totalorder %s1008_s27, 3 }
   0xc   : > { %p1011_p7 = scmp.ge.s32.totalorder %s1355_s25, 1  ;;  %p231_p9 = scmp.lt.s32.totalorder %s1355_s25, 5 }
   0xd   : > { %s1792_s29 = smov (%p33_p4, %s1790_s29), 0  ;;  %p1451_p8 = por %p156_p6, %p155_p5 }
   0xe   : > { %1777 = sst [smem:[#allocation5_spill]] %s1792_s29  ;;  %s134_s8 = ssub.s32 %s1351_s24, %s1792_s29 }
   0xf   : > { %s139_s9 = sadd.s32 1, %s1335_s20  ;;  %s136_s10 = sor.u32 %s135_s30, %s134_s8 }
  0x10   : > { %p232_p10 = pnand %p1011_p7, %p231_p9  ;;  %p137_p11 = scmp.eq.s32.totalorder %s136_s10, 0 }
  0x11   : > { %p278_p12 = scmp.lt.s32.totalorder (!%p232_p10), %s1343_s22, 1  ;;  %s1015_s12 = sshll.u32 (!%p232_p10), %s1339_s21, 4  ;;  %v662_v0 = vld [vmem:[%s1772_s3 + $0x80] sm:$0xff] (!%p232_p10)  ;;  %v1357_v1 = vmov (!%p232_p10), 0   ;;  %v663_v2 = vld [vmem:[%s1772_s3 + $0x88] sm:$0xff] (!%p232_p10)  ;;  %v664_v6 = vld [vmem:[%s1772_s3 + $0x90] sm:$0xff] (!%p232_p10) }
  0x12   : > { %s1460_s11 = scalar_select %p137_p11, %s1335_s20, %s139_s9  }
  0x13   : > { %235 = sbr.rel (%p232_p10) target bundleno = 529 (0x211), region = 36  ;;  %p284_p13 = scmp.lt.s32.totalorder (!%p232_p10), %s1015_s12, 31  ;;  %533 = vmatprep.mubr.bf16.mxu0 (!%p232_p10), %v1357_v1  ;;  %1251 = vset.pattern.permute.xlu0 (!%p232_p10), %v1357_v1  ;;  %v646_v3 = vld [vmem:[%s1772_s3] sm:$0xff] (!%p232_p10)  ;;  %v647_v4 = vld [vmem:[%s1772_s3 + $0x8] sm:$0xff] (!%p232_p10)  ;;  %v1129_v5 = vpack.c.bf16 (!%p232_p10), %v663_v2, %v662_v0  ;;  %v665_v7 = vld [vmem:[%s1772_s3 + $0x98] sm:$0xff] (!%p232_p10)  ;;  %vm494_vm0 = vcmask (!%p232_p10), 1041408  }
  0x14   : > { %1252 = vset.pattern.permute.xlu1 (!%p232_p10), %v1357_v1  ;;  %v1131_v8 = vpack.c.bf16 (!%p232_p10), %v647_v4, %v646_v3  ;;  %v1133_v9 = vpack.c.bf16 (!%p232_p10), %v665_v7, %v664_v6  ;;  %vm469_vm1 = vcmask (!%p232_p10), 31744   ;;  %v648_v21 = vld [vmem:[%s1772_s3 + $0x10] sm:$0xff] (!%p232_p10)  ;;  %v649_v22 = vld [vmem:[%s1772_s3 + $0x18] sm:$0xff] (!%p232_p10)  ;;  %v666_v24 = vld [vmem:[%s1772_s3 + $0xa0] sm:$0xff] (!%p232_p10)  ;;  %s1048_s26 = sshll.u32 (!%p232_p10), %s1339_s21, 5  ;;  %s1358_s21 = smov (!%p232_p10), [#allocation2]  }
  0x15   : > { %1161 = vmatprep.subr.bf16.mxu1 (!%p232_p10), %v1129_v5  ;;  %v1135_v23 = vpack.c.bf16 (!%p232_p10), %v649_v22, %v648_v21  ;;  %v667_v25 = vld [vmem:[%s1772_s3 + $0xa8] sm:$0xff] (!%p232_p10)  ;;  %v650_v26 = vld [vmem:[%s1772_s3 + $0x20] sm:$0xff] (!%p232_p10)  ;;  %v668_v29 = vld [vmem:[%s1772_s3 + $0xb0] sm:$0xff] (!%p232_p10) }
  0x16   : > { %1169 = vmatpush3.bf16.msra.mxu1 (!%p232_p10), %v1131_v8  ;;  %v1137_v27 = vpack.c.bf16 (!%p232_p10), %v667_v25, %v666_v24  ;;  %v651_v28 = vld [vmem:[%s1772_s3 + $0x28] sm:$0xff] (!%p232_p10)  ;;  %v669_v30 = vld [vmem:[%s1772_s3 + $0xb8] sm:$0xff] (!%p232_p10)  ;;  %v652_v34 = vld [vmem:[%s1772_s3 + $0x30] sm:$0xff] (!%p232_p10) }
  0x17   : > { %1162 = vmatprep.subr.bf16.mxu1 (!%p232_p10), %v1133_v9  ;;  %v1139_v31 = vpack.c.bf16 (!%p232_p10), %v651_v28, %v650_v26  ;;  %v1141_v33 = vpack.c.bf16 (!%p232_p10), %v669_v30, %v668_v29  ;;  %v653_v35 = vld [vmem:[%s1772_s3 + $0x38] sm:$0xff] (!%p232_p10)  ;;  %v670_v37 = vld [vmem:[%s1772_s3 + $0xc0] sm:$0xff] (!%p232_p10)  ;;  %v671_v38 = vld [vmem:[%s1772_s3 + $0xc8] sm:$0xff] (!%p232_p10) }
  0x18   : > { %v1143_v40 = vpack.c.bf16 (!%p232_p10), %v653_v35, %v652_v34  ;;  %v1145_v41 = vpack.c.bf16 (!%p232_p10), %v671_v38, %v670_v37  ;;  %v654_v42 = vld [vmem:[%s1772_s3 + $0x40] sm:$0xff] (!%p232_p10)  ;;  %v655_v43 = vld [vmem:[%s1772_s3 + $0x48] sm:$0xff] (!%p232_p10)  ;;  %v672_v45 = vld [vmem:[%s1772_s3 + $0xd0] sm:$0xff] (!%p232_p10) }
  0x19   : > { %v673_v46 = vld [vmem:[%s1772_s3 + $0xd8] sm:$0xff] (!%p232_p10)  ;;  %v1147_v48 = vpack.c.bf16 (!%p232_p10), %v655_v43, %v654_v42  ;;  %v656_v51 = vld [vmem:[%s1772_s3 + $0x50] sm:$0xff] (!%p232_p10)  ;;  %v674_v54 = vld [vmem:[%s1772_s3 + $0xe0] sm:$0xff] (!%p232_p10) }
  0x1a   : > { %s279_s8 = scalar_select %p278_p12, %s1343_s22, 1  ;;  %1170 = vmatpush3.bf16.msra.mxu1 %v1135_v23  ;;  %v1149_v50 = vpack.c.bf16 %v673_v46, %v672_v45  ;;  %v657_v52 = vld [vmem:[%s1772_s3 + $0x58] sm:$0xff]  ;;  %v675_v55 = vld [vmem:[%s1772_s3 + $0xe8] sm:$0xff]  ;;  %v658_v59 = vld [vmem:[%s1772_s3 + $0x60] sm:$0xff] }
  0x1b   : > { %s1794_s12 = smov (!%p284_p13, %s1015_s12), 31  ;;  %1163 = vmatprep.subr.bf16.mxu1 %v1137_v27  ;;  %v1151_v57 = vpack.c.bf16 %v657_v52, %v656_v51  ;;  %v1153_v58 = vpack.c.bf16 %v675_v55, %v674_v54  ;;  %v659_v60 = vld [vmem:[%s1772_s3 + $0x68] sm:$0xff]  ;;  %v676_v7 = vld [vmem:[%s1772_s3 + $0xf0] sm:$0xff] }
  0x1c   : > { %s1047_s15 = sshll.u32 %s279_s8, 2  ;;  %s1020_s16 = sshll.u32 %s279_s8, 5  ;;  %v1155_v63 = vpack.c.bf16 %v659_v60, %v658_v59 }
  0x1d   : > { %s282_s27 = scalar_lea.vmem %s1769_s0, %s1047_s15  ;;  %s1016_s30 = sshll.u32 %s1794_s12, 2 }
  0x1e   : > { %s1492_s10 = scalar_lea.vmem %s1770_s1, %s1016_s30  ;;  %v1030_v10 = vld.sshfl [vmem:[%s282_s27] sm:$0x33 pattern:$0x76325410]  ;;  %s1494_s13 = sadd.s32 %s1020_s16, %s1794_s12  ;;  %1171 = vmatpush3.bf16.msra.mxu1 %v1139_v31 }
  0x1f   : > { %v468_v11 = vcombine.high %v1030_v10, %v1030_v10  ;;  %v496_v12 = vsel %vm494_vm0, %v1030_v10, 0  ;;  %s1018_s8 = sshll.u32 %s1794_s12, 3  ;;  %v1253_v13 = vld [vmem:[%s1492_s10] sm:$0xff]   ;;  %v1254_v16 = vld [vmem:[%s1492_s10 + $0x8] sm:$0xff]   ;;  %v1255_v32 = vld [vmem:[%s1492_s10 + $0x10] sm:$0xff]   ;;  %1164 = vmatprep.subr.bf16.mxu1 %v1141_v33 }
  0x20   : > { %s1500_s29 = scalar_lea.vmem %s1771_s2, %s1018_s8  ;;  %v1256_v49 = vld [vmem:[%s1492_s10 + $0x18] sm:$0xff]   ;;  %v1257_v0 = vld [vmem:[%s1492_s10 + $0x20] sm:$0xff]   ;;  %v1258_v4 = vld [vmem:[%s1492_s10 + $0x28] sm:$0xff]  }
  0x21   : > { %1031 = vmatprep.subr.msk.bf16.mxu0 %vm494_vm0, %v468_v11  ;;  %v327_v14 = vld [vmem:[%s1500_s29 + $0x18] sm:$0xff]  ;;  %v329_v15 = vld [vmem:[%s1500_s29 + $0x28] sm:$0xff]  ;;  %v328_v17 = vld [vmem:[%s1500_s29 + $0x20] sm:$0xff] }
  0x22   : > { %502 = vmatpush1.bf16.msra.mxu0 %v496_v12  ;;  %357 = vperm.xlu0 %1251, %v327_v14   ;;  %v330_v18 = vld [vmem:[%s1500_s29 + $0x30] sm:$0xff]  ;;  %v331_v19 = vld [vmem:[%s1500_s29 + $0x38] sm:$0xff]  ;;  %v332_v20 = vld [vmem:[%s1500_s29 + $0x40] sm:$0xff] }
  0x23   : > { %1130 = vmatprep.subr.bf16.mxu0 %v1129_v5  ;;  %367 = vperm.xlu1 %1252, %v329_v15   ;;  %v333_v36 = vld [vmem:[%s1500_s29 + $0x48] sm:$0xff]  ;;  %v334_v39 = vld [vmem:[%s1500_s29 + $0x50] sm:$0xff]  ;;  %v335_v44 = vld [vmem:[%s1500_s29 + $0x58] sm:$0xff] }
  0x24   : > { %v336_v47 = vld [vmem:[%s1500_s29 + $0x60] sm:$0xff]  ;;  %1172 = vmatpush3.bf16.msra.mxu1 %v1143_v40  ;;  %v337_v56 = vld [vmem:[%s1500_s29 + $0x68] sm:$0xff]  ;;  %v338_v62 = vld [vmem:[%s1500_s29 + $0x70] sm:$0xff] }
  0x25   : > { %1032 = vmatmul.mubr.msk.bf16.vlgmr.msra.gmra.mrb[0].mxu0 %vm469_vm1, %v1253_v13  ;;  %v324_v53 = vld [vmem:[%s1500_s29] sm:$0xff]  ;;  %1165 = vmatprep.subr.bf16.mxu1 %v1145_v41  ;;  %v325_v61 = vld [vmem:[%s1500_s29 + $0x8] sm:$0xff]  ;;  %v326_v2 = vld [vmem:[%s1500_s29 + $0x10] sm:$0xff] }
  0x26   : > { %543 = vmatprep.mubr.bf16.mxu0 %v1357_v1  ;;  %1132 = vmatpush3.bf16.msra.mxu0 %v1131_v8  ;;  %v339_v3 = vld [vmem:[%s1500_s29 + $0x78] sm:$0xff]  ;;  %v1259_v5 = vld [vmem:[%s1492_s10 + $0x30] sm:$0xff]   ;;  %s1043_s29 = sshll.u32 %s1343_s22, 6  ;;  %s1265_s22 = sshll.u32 %s1358_s21, 4  ;;  %s1266_s22 = int_to_ptr.vmem [resolvable:$false] %s1265_s22 }
  0x27   : > { %1134 = vmatprep.subr.bf16.mxu0 %v1133_v9  ;;  %362 = vperm.xlu0 %1251, %v328_v17   ;;  %v1260_v6 = vld [vmem:[%s1492_s10 + $0x38] sm:$0xff]   ;;  %v660_v10 = vld [vmem:[%s1772_s3 + $0x70] sm:$0xff]  ;;  %s264_s10 = sand.u32 1, %s1331_s19   ;;  %s863_s27 = sadd.s32 %s1048_s26, %s1043_s29 }
  0x28   : > { %372 = vperm.xlu1 %1252, %v330_v18   ;;  %1173 = vmatpush3.bf16.msra.mxu1 %v1147_v48  ;;  %v677_v8 = vld [vmem:[%s1772_s3 + $0xf8] sm:$0xff]  ;;  %s1012_s16 = sshll.u32 %s264_s10, 8  ;;  %s1044_s30 = sshll.u32 %s863_s27, 7 }
  0x29   : > { %1166 = vmatprep.subr.bf16.mxu1 %v1149_v50  ;;  %v1157_v9 = vpack.c.bf16 %v677_v8, %v676_v7  ;;  %s1627_s17 = scalar_lea.vmem [#allocation2], %s1012_s16  ;;  %s1673_s15 = scalar_lea.hbm %s1773_s4, %s1044_s30 }
  0x2a   : > { %1136 = vmatpush3.bf16.msra.mxu0 %v1135_v23  ;;  %s866_s9 = sshll.u32 %s1627_s17, 4  ;;  %s1679_s12 = scalar_lea.sflag [#allocation3], %s264_s10  ;;  %s1675_s9 = int_to_ptr.vmem [resolvable:$true] %s866_s9 }
  0x2b   : > { %377 = vperm.xlu0 %1251, %v331_v19   ;;  %1138 = vmatprep.subr.bf16.mxu0 %v1137_v27  ;;  %s1261_s16 = scalar_lea.vmem %s1675_s9, 4096  ;;  %p1268_p4 = scmp.lt.s32.totalorder %s1675_s9, %s1266_s22 }
  0x2c   : > { %382 = vperm.xlu1 %1252, %v332_v20   ;;  %1174 = vmatpush3.bf16.msra.mxu1 %v1151_v57  ;;  %p1262_p0 = scmp.ne.s32.totalorder %s1675_s9, %s1261_s16 }
  0x2d   : > { %1033 = vmatmul.mubr.msk.bf16.gmra.mrb[4].mxu0 %vm469_vm1, %v1254_v16  ;;  %1167 = vmatprep.subr.bf16.mxu1 %v1153_v58 }
  0x2e   : > { %553 = vmatprep.mubr.bf16.mxu0 %v1357_v1  ;;  %1140 = vmatpush3.bf16.msra.mxu0 %v1139_v31  ;;  %p1263_p1 = pnand %p1262_p0, %p1442_p3 }
  0x2f   : > { %387 = vperm.xlu0 %1251, %v333_v36   ;;  %1142 = vmatprep.subr.bf16.mxu0 %v1141_v33 }
  0x30   : > { %392 = vperm.xlu1 %1252, %v334_v39   ;;  %1175 = vmatpush3.bf16.msra.mxu1 %v1155_v63  ;;  %p1264_p2 = pneg %p1263_p1 }
  0x31   : > { %1168 = vmatprep.subr.bf16.mxu1 %v1157_v9 }
  0x32   : > { %1144 = vmatpush3.bf16.msra.mxu0 %v1143_v40 }
  0x33   : > { %397 = vperm.xlu0 %1251, %v335_v44   ;;  %1146 = vmatprep.subr.bf16.mxu0 %v1145_v41 }
  0x34   : > { %402 = vperm.xlu1 %1252, %v336_v47  }
  0x35   : > { %1034 = vmatmul.mubr.msk.bf16.gmra.mrb[8].mxu0 %vm469_vm1, %v1255_v32 }
  0x36   : > { %563 = vmatprep.mubr.bf16.mxu0 %v1357_v1  ;;  %1148 = vmatpush3.bf16.msra.mxu0 %v1147_v48 }
  0x37   : > { %342 = vperm.xlu0 %1251, %v324_v53   ;;  %1150 = vmatprep.subr.bf16.mxu0 %v1149_v50 }
  0x38   : > { %407 = vperm.xlu1 %1252, %v337_v56  }
  0x3a   : > { %1152 = vmatpush3.bf16.msra.mxu0 %v1151_v57 }
  0x3b   : > { %347 = vperm.xlu0 %1251, %v325_v61   ;;  %1154 = vmatprep.subr.bf16.mxu0 %v1153_v58 }
  0x3c   : > { %412 = vperm.xlu1 %1252, %v338_v62  }
  0x3d   : > { %1035 = vmatmul.mubr.msk.bf16.gmra.mrb[12].mxu0 %vm469_vm1, %v1256_v49 }
  0x3e   : > { %573 = vmatprep.mubr.bf16.mxu0 %v1357_v1  ;;  %1156 = vmatpush3.bf16.msra.mxu0 %v1155_v63 }
  0x3f   : > { %352 = vperm.xlu0 %1251, %v326_v2   ;;  %1158 = vmatprep.subr.bf16.mxu0 %v1157_v9 }
  0x40   : > { %417 = vperm.xlu1 %1252, %v339_v3  }
  0x45   : > { %1036 = vmatmul.mubr.msk.bf16.gmra.mrb[16].mxu0 %vm469_vm1, %v1257_v0 }
  0x46   : > { %583 = vmatprep.mubr.bf16.mxu0 %v1357_v1 }
  0x4d   : > { %1037 = vmatmul.mubr.msk.bf16.gmra.mrb[20].mxu0 %vm469_vm1, %v1258_v4 }
  0x4e   : > { %593 = vmatprep.mubr.bf16.mxu0 %v1357_v1 }
  0x55   : > { %1038 = vmatmul.mubr.msk.bf16.gmra.mrb[24].mxu0 %vm469_vm1, %v1259_v5 }
  0x56   : > { %603 = vmatprep.mubr.bf16.mxu0 %v1357_v1  ;;  %v661_v1 = vld [vmem:[%s1772_s3 + $0x78] sm:$0xff] }
  0x57   : > { %v1159_v11 = vpack.c.bf16 %v661_v1, %v660_v10 }
  0x59   : > { %1160 = vmatpush3.bf16.msra.mxu0 %v1159_v11  ;;  %1176 = vmatpush3.bf16.msra.mxu1 %v1159_v11 }
  0x5d   : > { %1039 = vmatmul.mubr.msk.bf16.gmra.mrb[28].mxu0 %vm469_vm1, %v1260_v6 }
  0xa1   : > { %v358_v12 = vpop.permute.xlu0 %357 }
  0xa2   : > { %v368_v36 = vpop.permute.xlu1 %367 }
  0xa6   : > { %v363_v13 = vpop.permute.xlu0 %362 }
  0xa7   : > { %v373_v45 = vpop.permute.xlu1 %372 }
  0xaa   : > { %v1618_v14 = vpop.permute.xlu0 %377 }
  0xab   : > { %v383_v53 = vpop.permute.xlu1 %382 }
  0xae   : > { %v1620_v15 = vpop.permute.xlu0 %387 }
  0xaf   : > { %v393_v58 = vpop.permute.xlu1 %392 }
  0xb2   : > { %v1622_v16 = vpop.permute.xlu0 %397 }
  0xb3   : > { %v403_v0 = vpop.permute.xlu1 %402 }
  0xb6   : > { %v343_v17 = vpop.permute.xlu0 %342 }
  0xb7   : > { %v408_v10 = vpop.permute.xlu1 %407 }
  0xba   : > { %v348_v19 = vpop.permute.xlu0 %347 }
  0xbe   : > { %v353_v27 = vpop.permute.xlu0 %352 }
  0xf8   : > { %v535_v18 = vpop.f32.mrb[0].mxu0 }
  0xf9   : > { %v536_v20 = vadd.f32 %v535_v18, %v343_v17  ;;  %v537_v21 = vpop.f32.mrb[1].mxu0 }
  0xfa   : > { %v538_v22 = vadd.f32 %v537_v21, %v343_v17  ;;  %v539_v23 = vpop.f32.mrb[2].mxu0 }
  0xfb   : > { %614 = vst [vmem:[%s1627_s17] sm:$0xff] %v536_v20  ;;  %v540_v24 = vadd.f32 %v539_v23, %v348_v19  ;;  %v541_v25 = vpop.f32.mrb[3].mxu0 }
  0xfc   : > { %615 = vst [vmem:[%s1627_s17 + $0x8] sm:$0xff] %v538_v22  ;;  %v542_v26 = vadd.f32 %v541_v25, %v348_v19  ;;  %742 = vmatprep.mubr.f32.mxu0 %v538_v22 }
  0xfd   : > { %616 = vst [vmem:[%s1627_s17 + $0x10] sm:$0xff] %v540_v24  ;;  %743 = vmatmul.mubr.f32.vlgmr.msra.gmra.mrb[32].mxu0 %v536_v20 }
  0xfe   : > { %617 = vst [vmem:[%s1627_s17 + $0x18] sm:$0xff] %v542_v26  ;;  %747 = vmatprep.mubr.f32.mxu0 %v542_v26 }
 0x100   : > { %v545_v28 = vpop.f32.mrb[4].mxu0 }
 0x101   : > { %v546_v29 = vadd.f32 %v545_v28, %v353_v27  ;;  %v547_v30 = vpop.f32.mrb[5].mxu0  ;;  %748 = vmatmul.mubr.f32.gmra.mrb[34].mxu0 %v540_v24 }
 0x102   : > { %v548_v31 = vadd.f32 %v547_v30, %v353_v27  ;;  %v549_v32 = vpop.f32.mrb[6].mxu0 }
 0x103   : > { %618 = vst [vmem:[%s1627_s17 + $0x20] sm:$0xff] %v546_v29  ;;  %v550_v33 = vadd.f32 %v549_v32, %v358_v12  ;;  %v551_v34 = vpop.f32.mrb[7].mxu0 }
 0x104   : > { %619 = vst [vmem:[%s1627_s17 + $0x28] sm:$0xff] %v548_v31  ;;  %v552_v35 = vadd.f32 %v551_v34, %v358_v12  ;;  %752 = vmatprep.mubr.f32.mxu0 %v548_v31 }
 0x105   : > { %620 = vst [vmem:[%s1627_s17 + $0x30] sm:$0xff] %v550_v33  ;;  %753 = vmatmul.mubr.f32.gmra.mrb[36].mxu0 %v546_v29 }
 0x106   : > { %621 = vst [vmem:[%s1627_s17 + $0x38] sm:$0xff] %v552_v35  ;;  %757 = vmatprep.mubr.f32.mxu1 %v552_v35 }
 0x107   : > { %758 = vmatmul.mubr.f32.vlgmr.msra.gmra.mrb[0].mxu1 %v550_v33 }
 0x108   : > { %v555_v37 = vpop.f32.mrb[8].mxu0 }
 0x109   : > { %v556_v38 = vadd.f32 %v555_v37, %v363_v13  ;;  %v557_v39 = vpop.f32.mrb[9].mxu0 }
 0x10a   : > { %v558_v40 = vadd.f32 %v557_v39, %v363_v13  ;;  %v559_v41 = vpop.f32.mrb[10].mxu0 }
 0x10b   : > { %622 = vst [vmem:[%s1627_s17 + $0x40] sm:$0xff] %v556_v38  ;;  %v560_v42 = vadd.f32 %v559_v41, %v368_v36  ;;  %v561_v43 = vpop.f32.mrb[11].mxu0 }
 0x10c   : > { %623 = vst [vmem:[%s1627_s17 + $0x48] sm:$0xff] %v558_v40  ;;  %v562_v44 = vadd.f32 %v561_v43, %v368_v36  ;;  %762 = vmatprep.mubr.f32.mxu1 %v558_v40 }
 0x10d   : > { %624 = vst [vmem:[%s1627_s17 + $0x50] sm:$0xff] %v560_v42  ;;  %763 = vmatmul.mubr.f32.gmra.mrb[2].mxu1 %v556_v38 }
 0x10e   : > { %625 = vst [vmem:[%s1627_s17 + $0x58] sm:$0xff] %v562_v44  ;;  %767 = vmatprep.mubr.f32.mxu1 %v562_v44 }
 0x110   : > { %v565_v46 = vpop.f32.mrb[12].mxu0 }
 0x111   : > { %v566_v47 = vadd.f32 %v565_v46, %v373_v45  ;;  %v567_v48 = vpop.f32.mrb[13].mxu0  ;;  %768 = vmatmul.mubr.f32.gmra.mrb[4].mxu1 %v560_v42 }
 0x112   : > { %v568_v49 = vadd.f32 %v567_v48, %v373_v45  ;;  %v569_v50 = vpop.f32.mrb[14].mxu0 }
 0x113   : > { %626 = vst [vmem:[%s1627_s17 + $0x60] sm:$0xff] %v566_v47  ;;  %v570_v51 = vadd.f32 %v569_v50, %v1618_v14  ;;  %v571_v52 = vpop.f32.mrb[15].mxu0 }
 0x114   : > { %627 = vst [vmem:[%s1627_s17 + $0x68] sm:$0xff] %v568_v49  ;;  %v572_v54 = vadd.f32 %v571_v52, %v1618_v14  ;;  %772 = vmatprep.mubr.f32.mxu1 %v568_v49 }
 0x115   : > { %628 = vst [vmem:[%s1627_s17 + $0x70] sm:$0xff] %v570_v51  ;;  %773 = vmatmul.mubr.f32.gmra.mrb[6].mxu1 %v566_v47 }
 0x116   : > { %629 = vst [vmem:[%s1627_s17 + $0x78] sm:$0xff] %v572_v54  ;;  %777 = vmatprep.mubr.f32.mxu1 %v572_v54 }
 0x118   : > { %v575_v55 = vpop.f32.mrb[16].mxu0 }
 0x119   : > { %v576_v56 = vadd.f32 %v575_v55, %v383_v53  ;;  %v577_v57 = vpop.f32.mrb[17].mxu0  ;;  %778 = vmatmul.mubr.f32.gmra.mrb[8].mxu1 %v570_v51 }
 0x11a   : > { %v578_v59 = vadd.f32 %v577_v57, %v383_v53  ;;  %v579_v60 = vpop.f32.mrb[18].mxu0 }
 0x11b   : > { %630 = vst [vmem:[%s1627_s17 + $0x80] sm:$0xff] %v576_v56  ;;  %v580_v61 = vadd.f32 %v579_v60, %v1620_v15  ;;  %v581_v62 = vpop.f32.mrb[19].mxu0 }
 0x11c   : > { %631 = vst [vmem:[%s1627_s17 + $0x88] sm:$0xff] %v578_v59  ;;  %v582_v63 = vadd.f32 %v581_v62, %v1620_v15  ;;  %782 = vmatprep.mubr.f32.mxu1 %v578_v59 }
 0x11d   : > { %632 = vst [vmem:[%s1627_s17 + $0x90] sm:$0xff] %v580_v61  ;;  %783 = vmatmul.mubr.f32.gmra.mrb[10].mxu1 %v576_v56 }
 0x11e   : > { %633 = vst [vmem:[%s1627_s17 + $0x98] sm:$0xff] %v582_v63  ;;  %787 = vmatprep.mubr.f32.mxu1 %v582_v63 }
 0x120   : > { %v585_v2 = vpop.f32.mrb[20].mxu0 }
 0x121   : > { %v586_v3 = vadd.f32 %v585_v2, %v393_v58  ;;  %v587_v4 = vpop.f32.mrb[21].mxu0  ;;  %788 = vmatmul.mubr.f32.gmra.mrb[12].mxu1 %v580_v61 }
 0x122   : > { %v588_v5 = vadd.f32 %v587_v4, %v393_v58  ;;  %v589_v6 = vpop.f32.mrb[22].mxu0 }
 0x123   : > { %634 = vst [vmem:[%s1627_s17 + $0xa0] sm:$0xff] %v586_v3  ;;  %v590_v7 = vadd.f32 %v589_v6, %v1622_v16  ;;  %v591_v8 = vpop.f32.mrb[23].mxu0 }
 0x124   : > { %635 = vst [vmem:[%s1627_s17 + $0xa8] sm:$0xff] %v588_v5  ;;  %v592_v9 = vadd.f32 %v591_v8, %v1622_v16  ;;  %792 = vmatprep.mubr.f32.mxu1 %v588_v5  ;;  %v413_v16 = vpop.permute.xlu1 %412 }
 0x125   : > { %636 = vst [vmem:[%s1627_s17 + $0xb0] sm:$0xff] %v590_v7  ;;  %793 = vmatmul.mubr.f32.gmra.mrb[14].mxu1 %v586_v3 }
 0x126   : > { %637 = vst [vmem:[%s1627_s17 + $0xb8] sm:$0xff] %v592_v9  ;;  %797 = vmatprep.mubr.f32.mxu1 %v592_v9 }
 0x128   : > { %v595_v1 = vpop.f32.mrb[24].mxu0  ;;  %v418_v22 = vpop.permute.xlu1 %417 }
 0x129   : > { %v596_v11 = vadd.f32 %v595_v1, %v403_v0  ;;  %v597_v12 = vpop.f32.mrb[25].mxu0  ;;  %798 = vmatmul.mubr.f32.gmra.mrb[16].mxu1 %v590_v7 }
 0x12a   : > { %v598_v13 = vadd.f32 %v597_v12, %v403_v0  ;;  %v599_v14 = vpop.f32.mrb[26].mxu0 }
 0x12b   : > { %638 = vst [vmem:[%s1627_s17 + $0xc0] sm:$0xff] %v596_v11  ;;  %v600_v15 = vadd.f32 %v599_v14, %v408_v10  ;;  %v601_v17 = vpop.f32.mrb[27].mxu0 }
 0x12c   : > { %639 = vst [vmem:[%s1627_s17 + $0xc8] sm:$0xff] %v598_v13  ;;  %v602_v18 = vadd.f32 %v601_v17, %v408_v10  ;;  %802 = vmatprep.mubr.f32.mxu1 %v598_v13 }
 0x12d   : > { %640 = vst [vmem:[%s1627_s17 + $0xd0] sm:$0xff] %v600_v15  ;;  %803 = vmatmul.mubr.f32.gmra.mrb[18].mxu1 %v596_v11 }
 0x12e   : > { %641 = vst [vmem:[%s1627_s17 + $0xd8] sm:$0xff] %v602_v18  ;;  %807 = vmatprep.mubr.f32.mxu1 %v602_v18 }
 0x130   : > { %v605_v19 = vpop.f32.mrb[28].mxu0 }
 0x131   : > { %v606_v20 = vadd.f32 %v605_v19, %v413_v16  ;;  %v607_v21 = vpop.f32.mrb[29].mxu0  ;;  %808 = vmatmul.mubr.f32.gmra.mrb[20].mxu1 %v600_v15 }
 0x132   : > { %v608_v23 = vadd.f32 %v607_v21, %v413_v16  ;;  %v609_v24 = vpop.f32.mrb[30].mxu0 }
 0x133   : > { %642 = vst [vmem:[%s1627_s17 + $0xe0] sm:$0xff] %v606_v20  ;;  %v610_v25 = vadd.f32 %v609_v24, %v418_v22  ;;  %v611_v26 = vpop.f32.mrb[31].mxu0 }
 0x134   : > { %643 = vst [vmem:[%s1627_s17 + $0xe8] sm:$0xff] %v608_v23  ;;  %v612_v27 = vadd.f32 %v611_v26, %v418_v22  ;;  %812 = vmatprep.mubr.f32.mxu1 %v608_v23 }
 0x135   : > { %644 = vst [vmem:[%s1627_s17 + $0xf0] sm:$0xff] %v610_v25  ;;  %813 = vmatmul.mubr.f32.gmra.mrb[22].mxu1 %v606_v20 }
 0x136   : > { %645 = vst [vmem:[%s1627_s17 + $0xf8] sm:$0xff] %v612_v27  ;;  %817 = vmatprep.mubr.f32.mxu1 %v612_v27  ;;  %s1267_s17 = scalar_lea.vmem %s1266_s22, 8192 }
 0x137   : > { %p1269_p5 = scmp.lt.s32.totalorder %s1267_s17, %s1261_s16 }
 0x139   : > { %818 = vmatmul.mubr.f32.gmra.mrb[24].mxu1 %v610_v25  ;;  %p1270_p6 = por %p1269_p5, %p1268_p4 }
 0x13b   : > { %p1271_p7 = pnand %p1270_p6, %p1264_p2 }
 0x13d   : > { %1274 = shalt.err (!%p1271_p7)
}
 0x13e   : > { %s1275_s10 = scalar_lea.hbm %s1673_s15, 4096  ;;  %s1279_s27 = scalar_lea.hbm %s1773_s4, 16384 }
 0x13f   : > { %p1276_p9 = scmp.ne.s32.totalorder %s1673_s15, %s1275_s10  ;;  %p1280_p12 = scmp.lt.u32.totalorder %s1673_s15, %s1773_s4 }
 0x140   : > { %p1281_p13 = scmp.lt.u32.totalorder %s1279_s27, %s1275_s10  ;;  %p1283_p1 = scmp.lt.u32.totalorder %s1275_s10, %s1673_s15 }
 0x141   : > { %p1277_p10 = pnand %p1276_p9, %p1442_p3 }
 0x142   : > { %p1282_p0 = por %p1281_p13, %p1280_p12 }
 0x143   : > { %p1278_p11 = pneg %p1277_p10 }
 0x144   : > { %p1284_p2 = por %p1283_p1, %p1282_p0 }
 0x146   : > { %p1285_p4 = pnand %p1284_p2, %p1278_p11 }
 0x148   : > { %1288 = shalt.err (!%p1285_p4)
}
 0x149   : > { %s1359_s14 = smov 256   ;;  %s1360_s16 = smov 16   ;;  %vm823_vm2 = vcmask 15360  }
 0x14a   : > { %1177 = dma.vmem_to_hbm [thread:$0]  (%p1442_p3), %s1675_s9, 4096, %s1673_s15, %s1679_s12, %s1359_s14, %s1359_s14, %s1360_s16  }
 0x14b   : > { %s1021_s21 = sshll.u32 %s1494_s13, 3 }
 0x14c   : > { %s1707_s26 = scalar_lea.vmem %s1774_s5, %s1021_s21 }
 0x1d0   : > { %v1081_v28 = vpop.f32.mrb[32].mxu0 }
 0x1d1   : > { %v1082_v29 = vpop.f32.mrb[33].mxu0 }
 0x1d2   : > { %v1083_v30 = vadd.f32 %v1082_v29, %v1081_v28 }
 0x1d4   : > { %824 = vst.msk [vmem:[%s1707_s26] sm:$0xff] %vm823_vm2, %v1083_v30  ;;  %v1084_v31 = vpop.f32.mrb[34].mxu0 }
 0x1d5   : > { %v1085_v32 = vpop.f32.mrb[35].mxu0 }
 0x1d6   : > { %v1086_v33 = vadd.f32 %v1085_v32, %v1084_v31 }
 0x1d8   : > { %825 = vst.msk [vmem:[%s1707_s26 + $0x8] sm:$0xff] %vm823_vm2, %v1086_v33  ;;  %v1087_v34 = vpop.f32.mrb[36].mxu0 }
 0x1d9   : > { %v1088_v35 = vpop.f32.mrb[37].mxu0 }
 0x1da   : > { %v1089_v36 = vadd.f32 %v1088_v35, %v1087_v34  ;;  %v1090_v37 = vpop.f32.mrb[0].mxu1 }
 0x1db   : > { %v1091_v38 = vpop.f32.mrb[1].mxu1 }
 0x1dc   : > { %826 = vst.msk [vmem:[%s1707_s26 + $0x10] sm:$0xff] %vm823_vm2, %v1089_v36  ;;  %v1092_v39 = vadd.f32 %v1091_v38, %v1090_v37 }
 0x1de   : > { %827 = vst.msk [vmem:[%s1707_s26 + $0x18] sm:$0xff] %vm823_vm2, %v1092_v39 }
 0x1e0   : > { %v1093_v40 = vpop.f32.mrb[2].mxu1 }
 0x1e1   : > { %v1094_v41 = vpop.f32.mrb[3].mxu1 }
 0x1e2   : > { %v1095_v42 = vadd.f32 %v1094_v41, %v1093_v40 }
 0x1e4   : > { %828 = vst.msk [vmem:[%s1707_s26 + $0x20] sm:$0xff] %vm823_vm2, %v1095_v42  ;;  %v1096_v43 = vpop.f32.mrb[4].mxu1 }
 0x1e5   : > { %v1097_v44 = vpop.f32.mrb[5].mxu1 }
 0x1e6   : > { %v1098_v45 = vadd.f32 %v1097_v44, %v1096_v43 }
 0x1e8   : > { %829 = vst.msk [vmem:[%s1707_s26 + $0x28] sm:$0xff] %vm823_vm2, %v1098_v45  ;;  %v1099_v46 = vpop.f32.mrb[6].mxu1 }
 0x1e9   : > { %v1100_v47 = vpop.f32.mrb[7].mxu1 }
 0x1ea   : > { %v1101_v48 = vadd.f32 %v1100_v47, %v1099_v46 }
 0x1ec   : > { %830 = vst.msk [vmem:[%s1707_s26 + $0x30] sm:$0xff] %vm823_vm2, %v1101_v48  ;;  %v1102_v49 = vpop.f32.mrb[8].mxu1 }
 0x1ed   : > { %v1103_v50 = vpop.f32.mrb[9].mxu1 }
 0x1ee   : > { %v1104_v51 = vadd.f32 %v1103_v50, %v1102_v49 }
 0x1f0   : > { %831 = vst.msk [vmem:[%s1707_s26 + $0x38] sm:$0xff] %vm823_vm2, %v1104_v51  ;;  %v1105_v52 = vpop.f32.mrb[10].mxu1 }
 0x1f1   : > { %v1106_v53 = vpop.f32.mrb[11].mxu1 }
 0x1f2   : > { %v1107_v54 = vadd.f32 %v1106_v53, %v1105_v52 }
 0x1f4   : > { %832 = vst.msk [vmem:[%s1707_s26 + $0x40] sm:$0xff] %vm823_vm2, %v1107_v54  ;;  %v1108_v55 = vpop.f32.mrb[12].mxu1 }
 0x1f5   : > { %v1109_v56 = vpop.f32.mrb[13].mxu1 }
 0x1f6   : > { %v1110_v57 = vadd.f32 %v1109_v56, %v1108_v55 }
 0x1f8   : > { %833 = vst.msk [vmem:[%s1707_s26 + $0x48] sm:$0xff] %vm823_vm2, %v1110_v57  ;;  %v1111_v58 = vpop.f32.mrb[14].mxu1 }
 0x1f9   : > { %v1112_v59 = vpop.f32.mrb[15].mxu1 }
 0x1fa   : > { %v1113_v60 = vadd.f32 %v1112_v59, %v1111_v58 }
 0x1fc   : > { %834 = vst.msk [vmem:[%s1707_s26 + $0x50] sm:$0xff] %vm823_vm2, %v1113_v60  ;;  %v1114_v61 = vpop.f32.mrb[16].mxu1 }
 0x1fd   : > { %v1115_v62 = vpop.f32.mrb[17].mxu1 }
 0x1fe   : > { %v1116_v63 = vadd.f32 %v1115_v62, %v1114_v61 }
 0x200   : > { %835 = vst.msk [vmem:[%s1707_s26 + $0x58] sm:$0xff] %vm823_vm2, %v1116_v63  ;;  %v1117_v0 = vpop.f32.mrb[18].mxu1 }
 0x201   : > { %v1118_v2 = vpop.f32.mrb[19].mxu1 }
 0x202   : > { %v1119_v3 = vadd.f32 %v1118_v2, %v1117_v0 }
 0x204   : > { %836 = vst.msk [vmem:[%s1707_s26 + $0x60] sm:$0xff] %vm823_vm2, %v1119_v3  ;;  %v1120_v4 = vpop.f32.mrb[20].mxu1 }
 0x205   : > { %v1121_v5 = vpop.f32.mrb[21].mxu1 }
 0x206   : > { %v1122_v6 = vadd.f32 %v1121_v5, %v1120_v4 }
 0x208   : > { %837 = vst.msk [vmem:[%s1707_s26 + $0x68] sm:$0xff] %vm823_vm2, %v1122_v6  ;;  %v1123_v7 = vpop.f32.mrb[22].mxu1 }
 0x209   : > { %v1124_v8 = vpop.f32.mrb[23].mxu1 }
 0x20a   : > { %v1125_v9 = vadd.f32 %v1124_v8, %v1123_v7 }
 0x20c   : > { %838 = vst.msk [vmem:[%s1707_s26 + $0x70] sm:$0xff] %vm823_vm2, %v1125_v9  ;;  %v1126_v10 = vpop.f32.mrb[24].mxu1 }
 0x20d   : > { %v1127_v1 = vpop.f32.mrb[25].mxu1 }
 0x20e   : > { %v1128_v11 = vadd.f32 %v1127_v1, %v1126_v10 }
 0x210   : > { %839 = vst.msk [vmem:[%s1707_s26 + $0x78] sm:$0xff] %vm823_vm2, %v1128_v11 }
 0x211 PF: > { %p1183_p3 = scmp.ge.s32.totalorder %s1355_s25, 2  ;;  %s885_s6 = sand.u32 1, %s1327_s18  }
 0x212   : > { %s886_s13 = scalar_lea.sflag [#allocation3], %s885_s6 }
 0x213   : > { %p1180_p5 = pnand %p1183_p3, %p1451_p8 }
 0x215   : > { %1322 = dma.done.wait (!%p1180_p5), %s886_s13, 4096  }
 0x216   : > { %1324 = vsyncadd (!%p1180_p5), %s886_s13, 4294963200  ;;  %s19_s25 = sadd.s32 1, %s1355_s25   ;;  %s1779_s9 = sld [smem:[#allocation5_spill]] }
 0x217   : > { %p16_p6 = scmp.ge.s32.totalorder %s19_s25, 6   ;;  %s1780_s18 = smov %s1331_s19 }
 0x218   : > { %s1781_s19 = smov %s1335_s20  ;;  %s1782_s20 = smov %s1460_s11 }
 0x219   : > { %s1783_s21 = smov %s1347_s23  ;;  %s1784_s22 = smov %s1351_s24 }
 0x21a   : > { %s1785_s23 = smov %s1788_s28  ;;  %18 = sbr.rel (!%p16_p6) target bundleno = 5 (0x5), region = 89 }
 0x21c   : > { %s1786_s24 = smov %s1779_s9 }
 0x221   :  { %903 = vsyncpa [#allocation3], 1 }
 0x222   :  { %905 = vsyncpa [#allocation3 + $0x1], 1 }

</bundles_post_ra>
